<compile_context>
chip_gen: v5e
topology: v5e:2x2
jax: 0.10.0
libtpu: 0.0.40
codegen_flags: <defaults>
</compile_context>

<pallas_src>
from functools import lru_cache, partial

import jax
import jax.numpy as jnp
from jax.experimental import pallas as pl
from jax.experimental.pallas import tpu as pltpu

K = 4            # in_features (fixed by the module)
N_PAD = 128      # lane-dense padded out_features
M_SUBLANE = 8    # f32 sublane granularity
TM_MAX = 512     # block rows for the large-batch grid path

_CHOICES = ("linear1", "linear2", "linear3")
_OUT_FEATURES = {"linear1": 4, "linear2": 1, "linear3": 2}


def _dict_dense_kernel(choice_ref, x_ref, w_ref, o_ref):
    # choice_ref: (1,) int32 in SMEM — consumed only by the weight index_map.
    del choice_ref
    # x_ref: (tm, K) f32, w_ref: (K, N_PAD) f32 (selected slab, Squeezed dim).
    # Single MXU push; the vector-extended slot is otherwise idle here.
    o_ref[...] = jnp.dot(
        x_ref[...], w_ref[...], preferred_element_type=jnp.float32
    ).astype(o_ref.dtype)


def _choose_tiling(m: int) -> tuple[int, int]:
    """Return (m_pad, tm): bucketed padded batch and block-row size."""
    if m <= TM_MAX:
        m_pad = max(M_SUBLANE, pl.next_power_of_2(m))
        return m_pad, m_pad
    m_pad = pl.cdiv(m, TM_MAX) * TM_MAX
    return m_pad, TM_MAX


@lru_cache(maxsize=None)
def _choice_index(choice: str) -> jax.Array:
    """Cached (1,) int32 device array for the choice — built once per choice."""
    return jnp.asarray([_CHOICES.index(choice)], dtype=jnp.int32)


@partial(jax.jit, static_argnames=("n_out",))
def _fused_forward(idx: jax.Array, x: jax.Array, w_stack: jax.Array,
                   n_out: int) -> jax.Array:
    """Pad -> pallas_call -> slice, all inside one compiled executable."""
    m = x.shape[0]
    m_pad, tm = _choose_tiling(m)

    # Robustness: the index becomes a block index in the weight index_map.
    idx = jnp.clip(idx, 0, len(_CHOICES) - 1)

    x_pad = jnp.pad(x.astype(jnp.float32), ((0, m_pad - m), (0, 0)))

    grid_spec = pltpu.PrefetchScalarGridSpec(
        num_scalar_prefetch=1,
        grid=(m_pad // tm,),
        in_specs=[
            # x: (tm, K) tile; K equals the full last dim.
            pl.BlockSpec((tm, K), lambda i, choice: (i, 0)),
            # stacked weights (3, K, N_PAD): pick slab via scalar prefetch.
            # Same block every grid step -> the pipeline does not re-fetch it.
            pl.BlockSpec(
                (pl.Squeezed(), K, N_PAD),
                lambda i, choice: (choice[0], 0, 0),
            ),
        ],
        out_specs=pl.BlockSpec((tm, N_PAD), lambda i, choice: (i, 0)),
    )

    y_pad = pl.pallas_call(
        _dict_dense_kernel,
        out_shape=jax.ShapeDtypeStruct((m_pad, N_PAD), jnp.float32),
        grid_spec=grid_spec,
        compiler_params=pltpu.CompilerParams(
            # Independent row blocks -> shard across TensorCores on v7x.
            dimension_semantics=("parallel",)
        ),
    )(idx, x_pad, w_stack)

    # Strip batch padding and the lane padding of the selected head.
    return y_pad[:m, :n_out]


def init_my_dict_dense_params(key: jax.Array) -> dict[str, jax.Array]:
    """Deterministic stand-in for torch.randn parameter init."""
    k1, k2, k3 = jax.random.split(key, 3)
    return {
        "linear1": jax.random.normal(k1, (4, 4), dtype=jnp.float32),
        "linear2": jax.random.normal(k2, (4, 1), dtype=jnp.float32),
        "linear3": jax.random.normal(k3, (4, 2), dtype=jnp.float32),
    }


def stack_params(params: dict[str, jax.Array]) -> jax.Array:
    """Zero-pad each weight to (K, 128) and stack to a (3, K, 128) slab."""
    slabs = []
    for name in _CHOICES:
        w = params[name].astype(jnp.float32)
        slabs.append(jnp.pad(w, ((0, 0), (0, N_PAD - w.shape[1]))))
    return jnp.stack(slabs, axis=0)


def my_dict_dense_forward(x: jax.Array, w_stack: jax.Array,
                          choice: str = "linear1") -> jax.Array:
    assert x.shape[-1] == K, f"expected in_features={K}, got {x.shape[-1]}"
    return _fused_forward(
        _choice_index(choice), x, w_stack, n_out=_OUT_FEATURES[choice]
    )


if __name__ == "__main__":
    key = jax.random.PRNGKey(0)
    params = init_my_dict_dense_params(key)
    w_stack = stack_params(params)

    # Same input as the reference script: x = torch.ones(1, 4)
    x = jnp.ones((1, 4), dtype=jnp.float32)
    for choice in _CHOICES:
        y = my_dict_dense_forward(x, w_stack, choice=choice)
        jax.block_until_ready(y)
        y_ref = x @ params[choice]
        assert y.shape == y_ref.shape, (choice, y.shape, y_ref.shape)
        assert jnp.allclose(y, y_ref, atol=1e-5, rtol=1e-5), choice

    # Batch-padding path (m=5 -> bucketed to 8 rows).
    xb = jax.random.normal(jax.random.PRNGKey(1), (5, 4), dtype=jnp.float32)
    for choice in _CHOICES:
        yb = my_dict_dense_forward(xb, w_stack, choice=choice)
        jax.block_until_ready(yb)
        yb_ref = xb @ params[choice]
        assert yb.shape == yb_ref.shape, (choice, yb.shape, yb_ref.shape)
        assert jnp.allclose(yb, yb_ref, atol=1e-5, rtol=1e-5), choice

    # Large-batch grid path (m=1000 -> m_pad=1024, TM=512, grid=(2,)).
    xl = jax.random.normal(jax.random.PRNGKey(2), (1000, 4), dtype=jnp.float32)
    for choice in _CHOICES:
        yl = my_dict_dense_forward(xl, w_stack, choice=choice)
        jax.block_until_ready(yl)
        yl_ref = xl @ params[choice]
        assert yl.shape == yl_ref.shape, (choice, yl.shape, yl_ref.shape)
        assert jnp.allclose(yl, yl_ref, atol=1e-4, rtol=1e-4), choice

    print("KERNEL_OK")
</pallas_src>

<mosaic_0001>
module attributes {stable_mosaic.version = 11 : i64} {
  func.func @_dict_dense_kernel(%arg0: i32, %arg1: memref<1xi32, #tpu.memory_space<smem>>, %arg2: memref<8x4xf32, #tpu.memory_space<vmem>>, %arg3: memref<1x4x128xf32, #tpu.memory_space<vmem>>, %arg4: memref<8x128xf32, #tpu.memory_space<vmem>>) attributes {dimension_semantics = [#tpu.dimension_semantics<parallel>], iteration_bounds = array<i64: 1>, scalar_prefetch = 1 : i64, scratch_operands = 0 : i64, tpu.core_type = #tpu.core_type<tc>, window_params = [{transform_indices = @transform_0, window_bounds = array<i64: 8, 4>}, {transform_indices = @transform_1, window_bounds = array<i64: 1, 4, 128>}, {transform_indices = @transform_2, window_bounds = array<i64: 8, 128>}]} {
    %c0 = arith.constant 0 : index
    %c0_0 = arith.constant 0 : index
    %0 = vector.load %arg2[%c0, %c0_0] : memref<8x4xf32, #tpu.memory_space<vmem>>, vector<8x4xf32>
    %c0_1 = arith.constant 0 : index
    %c0_2 = arith.constant 0 : index
    %c0_3 = arith.constant 0 : index
    %1 = vector.load %arg3[%c0_1, %c0_2, %c0_3] : memref<1x4x128xf32, #tpu.memory_space<vmem>>, vector<1x4x128xf32>
    %2 = vector.shape_cast %1 : vector<1x4x128xf32> to vector<4x128xf32>
    %cst = arith.constant dense<0.000000e+00> : vector<8x128xf32>
    %3 = tpu.matmul %0, %2, %cst {dimension_numbers = #tpu.dot_dimension_numbers<[1], [0], [0], [1], [0, 0, 1, 1], [], []>} : vector<8x4xf32>, vector<4x128xf32>, vector<8x128xf32> -> vector<8x128xf32>
    %c0_4 = arith.constant 0 : index
    %c0_5 = arith.constant 0 : index
    %4 = vector.load %arg4[%c0_4, %c0_5] : memref<8x128xf32, #tpu.memory_space<vmem>>, vector<8x128xf32>
    tpu.vector_store %arg4[%c0_4, %c0_5], %3 {strides = array<i32>} : memref<8x128xf32, #tpu.memory_space<vmem>>, vector<8x128xf32>,
    return
  }
  func.func @transform_0(%arg0: i32, %arg1: memref<1xi32, #tpu.memory_space<smem>>) -> (i32, i32) {
    %c0_i32 = arith.constant 0 : i32
    %c0_i32_0 = arith.constant 0 : i32
    return %arg0, %c0_i32 : i32, i32
  }
  func.func @transform_1(%arg0: i32, %arg1: memref<1xi32, #tpu.memory_space<smem>>) -> (i32, i32, i32) {
    %c0 = arith.constant 0 : index
    %0 = memref.load %arg1[%c0] : memref<1xi32, #tpu.memory_space<smem>>
    %c0_i32 = arith.constant 0 : i32
    %c0_i32_0 = arith.constant 0 : i32
    %c0_i32_1 = arith.constant 0 : i32
    return %0, %c0_i32, %c0_i32_0 : i32, i32, i32
  }
  func.func @transform_2(%arg0: i32, %arg1: memref<1xi32, #tpu.memory_space<smem>>) -> (i32, i32) {
    %c0_i32 = arith.constant 0 : i32
    %c0_i32_0 = arith.constant 0 : i32
    return %arg0, %c0_i32 : i32, i32
  }
}

</mosaic_0001>

<bundles_post_ra>
// kernel: _fused_forward.1
= control target key start
LH: loop header
LB: loop body
LE: loop exit
PB: predicated region body
PF: predicated region fallthrough
CT: control target
= control target key end

     0   :  { %vm36_vm0 = vcmask 1043456   ;;  %vm32_vm1 = vcmask 31744   ;;  %s109_s0 = inlined_call_operand.<no memory space> [shape: s32[1], index: 0, kind: input, shape index: {}]   ;;  %s110_s2 = inlined_call_operand.vmem [shape: f32[3,4,128], index: 2, kind: input, shape index: {}]   ;;  %s111_s1 = inlined_call_operand.vmem [shape: f32[8,4], index: 1, kind: input, shape index: {}]   ;;  %s112_s3 = inlined_call_operand.vmem [shape: f32[8,128], index: 3, kind: output, shape index: {}]  }
   0x1   :  { %p25_p0 = scmp.lt.s32.totalorder %s109_s0, 2  ;;  %v30_v0 = vld [vmem:[%s111_s1] sm:$0xff] }
   0x3   :  { %s114_s0 = smov (!%p25_p0, %s109_s0), 2 }
   0x4   :  { %s71_s16 = sshll.u32 %s114_s0, 2 }
   0x5   :  { %s28_s19 = scalar_lea.vmem %s110_s2, %s71_s16 }
   0x6   :  { %v31_v1 = vld [vmem:[%s28_s19] sm:$0xf] }
   0x7   :  { %72 = vmatpush.msk.msra.mxu0 %vm36_vm0, %v31_v1 }
   0x8   :  { %73 = vmatmul.msk.f32.vlgmr.msra.gmra.mxu0 %vm32_vm1, %v30_v0 }
  0x85   :  { %v57_v2 = vpop.f32.mrf.mxu0 }
  0x86   :  { %60 = vst [vmem:[%s112_s3] sm:$0xff] %v57_v2 }

</bundles_post_ra>
